<compile_context>
chip_gen: v7x
topology: tpu7x:2x2x1
jax: 0.10.0
libtpu: 0.0.40
codegen_flags: <defaults>
</compile_context>

<pallas_src>
import jax
import jax.numpy as jnp
from jax.experimental import pallas as pl
from jax.experimental.pallas import tpu as pltpu

# ---- configuration ----
BATCH = 2
CHANNELS = 3
IMG = 28                # 2x2 = 4 patches (real CLIP uses 224 -> 16x16 patches)
PATCH = 14              # CLIP ViT-L/14 patch size
VISION_DIM = 64         # surrogate vision width (real CLIP ViT-L/14: 1024)
CLIP_FEATURE_DIM = 768  # CLIPModel('openai/clip-vit-large-patch14').config.projection_dim
HIDDEN_DIM = 512        # module default hidden_dim
NUM_LABELS = 4
DROPOUT_SIZE = 0.1      # inference mode -> identity

NUM_PATCHES = (IMG // PATCH) ** 2                 # 4
PATCH_DIM = CHANNELS * PATCH * PATCH              # 588

# lane/sublane-friendly padded sizes
PATCH_DIM_PAD = 640                               # 588 -> 640 (multiple of 128)
OUT_PAD = 128                                     # 4   -> 128 (lane-dense output)
MAX_TB = 128                                      # batch-tile cap (MXU M-rows)


def _round_up(x, m):
    return -(-x // m) * m


def image_classifier_kernel(pooled_ref, w_fold_ref, b1_ref, w2_ref, b2_ref, out_ref):
    # pooled[TB,640] @ W_fold[640,512]  (folded: patch-embed @ vision-proj @ mlp.w1)
    h = jnp.dot(pooled_ref[...], w_fold_ref[...],
                preferred_element_type=jnp.float32) + b1_ref[...]          # [TB, 512] f32
    h = jnp.maximum(h, 0.0)                                                # ReLU (Dropout: identity)
    logits = jnp.dot(h.astype(jnp.bfloat16), w2_ref[...],
                     preferred_element_type=jnp.float32) + b2_ref[...]     # [TB, 128] f32
    out_ref[...] = logits.astype(out_ref.dtype)


def patchify(x):
    # NCHW -> [B, num_patches, C * patch * patch] (conv-as-matmul layout)
    B, C, H, W = x.shape
    hp, wp = H // PATCH, W // PATCH
    x = x.reshape(B, C, hp, PATCH, wp, PATCH)
    x = x.transpose(0, 2, 4, 1, 3, 5)        # [B, hp, wp, C, ph, pw]
    return x.reshape(B, hp * wp, C * PATCH * PATCH)


def init_params(key):
    ks = jax.random.split(key, 6)
    scale = lambda fan_in: 1.0 / jnp.sqrt(jnp.float32(fan_in))
    return {
        # surrogate backbone
        'w_embed': jax.random.normal(ks[0], (PATCH_DIM, VISION_DIM), jnp.float32) * scale(PATCH_DIM),
        'w_proj':  jax.random.normal(ks[1], (VISION_DIM, CLIP_FEATURE_DIM), jnp.float32) * scale(VISION_DIM),
        # MLP head (the module's own trainable params)
        'w1': jax.random.normal(ks[2], (CLIP_FEATURE_DIM, HIDDEN_DIM), jnp.float32) * scale(CLIP_FEATURE_DIM),
        'b1': jax.random.normal(ks[3], (1, HIDDEN_DIM), jnp.float32) * 0.01,
        'w2': jax.random.normal(ks[4], (HIDDEN_DIM, NUM_LABELS), jnp.float32) * scale(HIDDEN_DIM),
        'b2': jax.random.normal(ks[5], (1, NUM_LABELS), jnp.float32) * 0.01,
    }


def pack_params(p):
    """One-time: fold the three pre-ReLU matmuls in f32, pad lane-dense, cast to bf16."""
    # (588,64) @ (64,768) @ (768,512) -> (588,512), all in f32, quantized ONCE below.
    w_fold = p['w_embed'] @ p['w_proj'] @ p['w1']
    w_fold = jnp.pad(w_fold, ((0, PATCH_DIM_PAD - PATCH_DIM), (0, 0)))     # [640, 512]
    w2 = jnp.pad(p['w2'], ((0, 0), (0, OUT_PAD - NUM_LABELS)))             # [512, 128]
    b2 = jnp.pad(p['b2'], ((0, 0), (0, OUT_PAD - NUM_LABELS)))             # [1, 128]
    return {
        'w_fold': w_fold.astype(jnp.bfloat16),
        'b1':     p['b1'].astype(jnp.float32),   # biases / ReLU stay f32
        'w2':     w2.astype(jnp.bfloat16),
        'b2':     b2.astype(jnp.float32),
    }


@jax.jit
def image_only_classifier(image, packed):
    B = image.shape[0]
    # TB: multiple of 16 (bf16 sublane pack), grows with batch up to 128 MXU rows.
    TB = min(MAX_TB, _round_up(B, 16))
    B_pad = _round_up(B, TB)

    # Mean-pool hoisted into XLA (pooling is linear; cuts kernel input DMA 4x).
    patches = patchify(image).astype(jnp.float32)                 # [B, P, 588]
    pooled = jnp.mean(patches, axis=1)                            # [B, 588] f32
    pooled = jnp.pad(pooled, ((0, B_pad - B), (0, PATCH_DIM_PAD - PATCH_DIM)))
    pooled = pooled.astype(jnp.bfloat16)                          # [B_pad, 640] bf16

    grid = (B_pad // TB,)
    out = pl.pallas_call(
        image_classifier_kernel,
        out_shape=jax.ShapeDtypeStruct((B_pad, OUT_PAD), jnp.float32),
        grid_spec=pltpu.PrefetchScalarGridSpec(
            num_scalar_prefetch=0,
            grid=grid,
            in_specs=[
                # per-batch-tile activations
                pl.BlockSpec((TB, PATCH_DIM_PAD), lambda i: (i, 0)),
                # weights/biases: constant block index -> VMEM-resident across grid
                # steps (total ~0.77 MiB; fits all generations with >20x headroom).
                pl.BlockSpec((PATCH_DIM_PAD, HIDDEN_DIM), lambda i: (0, 0)),
                pl.BlockSpec((1, HIDDEN_DIM),             lambda i: (0, 0)),
                pl.BlockSpec((HIDDEN_DIM, OUT_PAD),       lambda i: (0, 0)),
                pl.BlockSpec((1, OUT_PAD),                lambda i: (0, 0)),
            ],
            out_specs=pl.BlockSpec((TB, OUT_PAD), lambda i: (i, 0)),
        ),
        # Batch tiles are independent; only pays off (2nd TC on v7x) once grid > 1,
        # i.e. B > TB — at BATCH=2 the grid is (1,) and this is a no-op.
        compiler_params=pltpu.CompilerParams(
            dimension_semantics=("parallel",)),
    )(pooled, packed['w_fold'], packed['b1'], packed['w2'], packed['b2'])

    return out[:B, :NUM_LABELS]


def reference_forward(image, params):
    """Pure-JAX f32 reference (unpadded, unfolded) for validation."""
    patches = patchify(image).astype(jnp.float32)
    pooled = jnp.mean(patches, axis=1)
    emb = pooled @ params['w_embed']
    feats = emb @ params['w_proj']
    h = jnp.maximum(feats @ params['w1'] + params['b1'], 0.0)
    return h @ params['w2'] + params['b2']


if __name__ == "__main__":
    key = jax.random.PRNGKey(0)
    k_img, k_par = jax.random.split(key)
    image = jax.random.normal(k_img, (BATCH, CHANNELS, IMG, IMG), jnp.float32)
    params = init_params(k_par)
    packed = pack_params(params)

    logits = image_only_classifier(image, packed)
    jax.block_until_ready(logits)

    assert logits.shape == (BATCH, NUM_LABELS)
    assert bool(jnp.all(jnp.isfinite(logits)))

    ref = reference_forward(image, params)
    # Loose tolerance covers bf16 quantization of the folded weight / activations.
    assert bool(jnp.allclose(logits, ref, atol=1e-1, rtol=1e-1)), \
        f"mismatch: max abs err {float(jnp.max(jnp.abs(logits - ref)))}"

    print("KERNEL_OK")
</pallas_src>

<mosaic_0001>
module attributes {stable_mosaic.version = 11 : i64} {
  func.func @image_classifier_kernel(%arg0: i32, %arg1: memref<16x640xbf16, #tpu.memory_space<vmem>>, %arg2: memref<640x512xbf16, #tpu.memory_space<vmem>>, %arg3: memref<1x512xf32, #tpu.memory_space<vmem>>, %arg4: memref<512x128xbf16, #tpu.memory_space<vmem>>, %arg5: memref<1x128xf32, #tpu.memory_space<vmem>>, %arg6: memref<16x128xf32, #tpu.memory_space<vmem>>) attributes {dimension_semantics = [#tpu.dimension_semantics<parallel>], iteration_bounds = array<i64: 1>, scalar_prefetch = 0 : i64, scratch_operands = 0 : i64, tpu.core_type = #tpu.core_type<tc>, window_params = [{transform_indices = @transform_0, window_bounds = array<i64: 16, 640>}, {pipeline_mode = #tpu.pipeline_mode<synchronous>, transform_indices = @transform_1, window_bounds = array<i64: 640, 512>}, {pipeline_mode = #tpu.pipeline_mode<synchronous>, transform_indices = @transform_2, window_bounds = array<i64: 1, 512>}, {pipeline_mode = #tpu.pipeline_mode<synchronous>, transform_indices = @transform_3, window_bounds = array<i64: 512, 128>}, {pipeline_mode = #tpu.pipeline_mode<synchronous>, transform_indices = @transform_4, window_bounds = array<i64: 1, 128>}, {transform_indices = @transform_5, window_bounds = array<i64: 16, 128>}]} {
    %c0 = arith.constant 0 : index
    %c0_0 = arith.constant 0 : index
    %0 = vector.load %arg1[%c0, %c0_0] : memref<16x640xbf16, #tpu.memory_space<vmem>>, vector<16x640xbf16>
    %c0_1 = arith.constant 0 : index
    %c0_2 = arith.constant 0 : index
    %1 = vector.load %arg2[%c0_1, %c0_2] : memref<640x512xbf16, #tpu.memory_space<vmem>>, vector<640x512xbf16>
    %cst = arith.constant dense<0.000000e+00> : vector<16x512xf32>
    %2 = tpu.matmul %0, %1, %cst {dimension_numbers = #tpu.dot_dimension_numbers<[1], [0], [0], [1], [0, 0, 1, 1], [], []>} : vector<16x640xbf16>, vector<640x512xbf16>, vector<16x512xf32> -> vector<16x512xf32>
    %c0_3 = arith.constant 0 : index
    %c0_4 = arith.constant 0 : index
    %3 = vector.load %arg3[%c0_3, %c0_4] : memref<1x512xf32, #tpu.memory_space<vmem>>, vector<1x512xf32>
    %4 = vector.broadcast %3 : vector<1x512xf32> to vector<16x512xf32>
    %5 = arith.addf %2, %4 : vector<16x512xf32>
    %cst_5 = arith.constant 0.000000e+00 : f32
    %6 = vector.broadcast %cst_5 : f32 to vector<16x512xf32>
    %7 = arith.maximumf %5, %6 : vector<16x512xf32>
    %8 = arith.truncf %7 : vector<16x512xf32> to vector<16x512xbf16>
    %c0_6 = arith.constant 0 : index
    %c0_7 = arith.constant 0 : index
    %9 = vector.load %arg4[%c0_6, %c0_7] : memref<512x128xbf16, #tpu.memory_space<vmem>>, vector<512x128xbf16>
    %cst_8 = arith.constant dense<0.000000e+00> : vector<16x128xf32>
    %10 = tpu.matmul %8, %9, %cst_8 {dimension_numbers = #tpu.dot_dimension_numbers<[1], [0], [0], [1], [0, 0, 1, 1], [], []>} : vector<16x512xbf16>, vector<512x128xbf16>, vector<16x128xf32> -> vector<16x128xf32>
    %c0_9 = arith.constant 0 : index
    %c0_10 = arith.constant 0 : index
    %11 = vector.load %arg5[%c0_9, %c0_10] : memref<1x128xf32, #tpu.memory_space<vmem>>, vector<1x128xf32>
    %12 = vector.broadcast %11 : vector<1x128xf32> to vector<16x128xf32>
    %13 = arith.addf %10, %12 : vector<16x128xf32>
    %c0_11 = arith.constant 0 : index
    %c0_12 = arith.constant 0 : index
    %14 = vector.load %arg6[%c0_11, %c0_12] : memref<16x128xf32, #tpu.memory_space<vmem>>, vector<16x128xf32>
    tpu.vector_store %arg6[%c0_11, %c0_12], %13 {strides = array<i32>} : memref<16x128xf32, #tpu.memory_space<vmem>>, vector<16x128xf32>,
    return
  }
  func.func @transform_0(%arg0: i32) -> (i32, i32) {
    %c0_i32 = arith.constant 0 : i32
    %c0_i32_0 = arith.constant 0 : i32
    return %arg0, %c0_i32 : i32, i32
  }
  func.func @transform_1(%arg0: i32) -> (i32, i32) {
    %c0_i32 = arith.constant 0 : i32
    %c0_i32_0 = arith.constant 0 : i32
    %c0_i32_1 = arith.constant 0 : i32
    return %c0_i32, %c0_i32_0 : i32, i32
  }
  func.func @transform_2(%arg0: i32) -> (i32, i32) {
    %c0_i32 = arith.constant 0 : i32
    %c0_i32_0 = arith.constant 0 : i32
    %c0_i32_1 = arith.constant 0 : i32
    return %c0_i32, %c0_i32_0 : i32, i32
  }
  func.func @transform_3(%arg0: i32) -> (i32, i32) {
    %c0_i32 = arith.constant 0 : i32
    %c0_i32_0 = arith.constant 0 : i32
    %c0_i32_1 = arith.constant 0 : i32
    return %c0_i32, %c0_i32_0 : i32, i32
  }
  func.func @transform_4(%arg0: i32) -> (i32, i32) {
    %c0_i32 = arith.constant 0 : i32
    %c0_i32_0 = arith.constant 0 : i32
    %c0_i32_1 = arith.constant 0 : i32
    return %c0_i32, %c0_i32_0 : i32, i32
  }
  func.func @transform_5(%arg0: i32) -> (i32, i32) {
    %c0_i32 = arith.constant 0 : i32
    %c0_i32_0 = arith.constant 0 : i32
    return %arg0, %c0_i32 : i32, i32
  }
}

</mosaic_0001>

<bundles_post_ra>
// kernel: image_only_classifier.1
= control target key start
LH: loop header
LB: loop body
LE: loop exit
PB: predicated region body
PF: predicated region fallthrough
CT: control target
= control target key end

     0   :  { %10 = vsyncpa [#allocation3], 0  ;;  %s2244_s18 = smov [#allocation2]   ;;  %s2413_s0 = inlined_call_operand.vmem [shape: bf16[16,640], index: 0, kind: input, shape index: {}]   ;;  %s2414_s1 = inlined_call_operand.hbm [shape: bf16[640,512], index: 1, kind: input, shape index: {}]   ;;  %s2415_s2 = inlined_call_operand.vmem [shape: f32[1,512], index: 2, kind: input, shape index: {}]   ;;  %s2416_s3 = inlined_call_operand.vmem [shape: bf16[512,128], index: 3, kind: input, shape index: {}]   ;;  %s2417_s4 = inlined_call_operand.vmem [shape: f32[1,128], index: 4, kind: input, shape index: {}]   ;;  %s2418_s5 = inlined_call_operand.vmem [shape: f32[16,128], index: 5, kind: output, shape index: {}]  }
   0x1   :  { %s18_s19 = sshll.u32 %s2244_s18, 4  ;;  %s2220_s22 = scalar_lea.hbm %s2414_s1, 20480  ;;  %s19_s19 = int_to_ptr.vmem [resolvable:$true] %s18_s19 }
   0x2   :  { %p2221_p0 = scmp.ne.s32.totalorder %s2414_s1, %s2220_s22  ;;  %p2224_p1 = scmp.lt.u32.totalorder %s2220_s22, %s2414_s1 }
   0x4   :  { %p2226_p2 = pnand %p2224_p1, %p2221_p0 }
   0x6   :  { %2229 = shalt.err (!%p2226_p2)
}
   0x7   :  { %s2230_s27 = scalar_lea.vmem %s19_s19, 20480  ;;  %p2235_p4 = scmp.lt.s32.totalorder %s19_s19, %s19_s19 }
   0x8   :  { %p2231_p3 = scmp.ne.s32.totalorder %s19_s19, %s2230_s27  ;;  %p2236_p5 = scmp.lt.s32.totalorder %s2230_s27, %s2230_s27 }
   0xa   :  { %p2237_p6 = por %p2236_p5, %p2235_p4 }
   0xc   :  { %p2238_p7 = pnand %p2237_p6, %p2231_p3 }
   0xe   :  { %2241 = shalt.err (!%p2238_p7)
}
   0xf   :  { %s2245_s28 = smov 256   ;;  %s2246_s29 = smov 16  }
  0x10   :  { %24 = dma.hbm_to_vmem [thread:$0]  %s2414_s1, 20480, %s19_s19, [#allocation3], %s2245_s28, %s2245_s28, %s2246_s29  }
  0x11   :  { %2242 = dma.done.wait [#allocation3], 20480  }
  0x12   :  { %2243 = vsyncadd [#allocation3], 4294946816  ;;  %v1941_v0 = vld [vmem:[#allocation2 + $0x4] ss:$16 sps:$4 sm:$0xff]   ;;  %v1943_v1 = vld [vmem:[#allocation2 + $0xc] ss:$16 sps:$4 sm:$0xff]  }
  0x13   :  { %1049 = vmatprep.subr.bf16.mxu0 %v1941_v0  ;;  %v1945_v2 = vld [vmem:[#allocation2] ss:$16 sps:$4 sm:$0xff]   ;;  %v1946_v3 = vld [vmem:[#allocation2 + $0x8] ss:$16 sps:$4 sm:$0xff]   ;;  %1178 = vmatprep.subr.bf16.mxu1 %v1943_v1  ;;  %v1947_v4 = vld [vmem:[#allocation2 + $0x24] ss:$16 sps:$4 sm:$0xff]  }
  0x14   :  { %1050 = vmatpush1.bf16.msra.mxu0 %v1945_v2  ;;  %1179 = vmatpush1.bf16.msra.mxu1 %v1946_v3  ;;  %v1949_v5 = vld [vmem:[#allocation2 + $0x2c] ss:$16 sps:$4 sm:$0xff]   ;;  %v1951_v6 = vld [vmem:[#allocation2 + $0x20] ss:$16 sps:$4 sm:$0xff]   ;;  %v1952_v7 = vld [vmem:[#allocation2 + $0x28] ss:$16 sps:$4 sm:$0xff]  }
  0x15   :  { %1051 = vmatprep.subr.bf16.mxu0 %v1947_v4  ;;  %1180 = vmatprep.subr.bf16.mxu1 %v1949_v5  ;;  %v1953_v8 = vld [vmem:[#allocation2 + $0x44] ss:$16 sps:$4 sm:$0xff]   ;;  %v1955_v9 = vld [vmem:[#allocation2 + $0x4c] ss:$16 sps:$4 sm:$0xff]   ;;  %v1957_v10 = vld [vmem:[#allocation2 + $0x40] ss:$16 sps:$4 sm:$0xff]  }
  0x16   :  { %v1958_v11 = vld [vmem:[#allocation2 + $0x48] ss:$16 sps:$4 sm:$0xff]   ;;  %v1959_v12 = vld [vmem:[#allocation2 + $0x64] ss:$16 sps:$4 sm:$0xff]   ;;  %v1961_v13 = vld [vmem:[#allocation2 + $0x6c] ss:$16 sps:$4 sm:$0xff]  }
  0x17   :  { %v1963_v14 = vld [vmem:[#allocation2 + $0x60] ss:$16 sps:$4 sm:$0xff]   ;;  %v1964_v15 = vld [vmem:[#allocation2 + $0x68] ss:$16 sps:$4 sm:$0xff]   ;;  %v1965_v16 = vld [vmem:[#allocation2 + $0x84] ss:$16 sps:$4 sm:$0xff]  }
  0x18   :  { %1052 = vmatpush1.bf16.msra.mxu0 %v1951_v6  ;;  %1181 = vmatpush1.bf16.msra.mxu1 %v1952_v7  ;;  %v1967_v17 = vld [vmem:[#allocation2 + $0x8c] ss:$16 sps:$4 sm:$0xff]   ;;  %v1969_v18 = vld [vmem:[#allocation2 + $0x80] ss:$16 sps:$4 sm:$0xff]   ;;  %v1970_v19 = vld [vmem:[#allocation2 + $0x88] ss:$16 sps:$4 sm:$0xff]  }
  0x19   :  { %1053 = vmatprep.subr.bf16.mxu0 %v1953_v8  ;;  %1182 = vmatprep.subr.bf16.mxu1 %v1955_v9  ;;  %v1971_v20 = vld [vmem:[#allocation2 + $0xa4] ss:$16 sps:$4 sm:$0xff]   ;;  %v1973_v21 = vld [vmem:[#allocation2 + $0xac] ss:$16 sps:$4 sm:$0xff]   ;;  %v1975_v22 = vld [vmem:[#allocation2 + $0xa0] ss:$16 sps:$4 sm:$0xff]  }
  0x1a   :  { %v1976_v23 = vld [vmem:[#allocation2 + $0xa8] ss:$16 sps:$4 sm:$0xff]   ;;  %v1977_v24 = vld [vmem:[#allocation2 + $0xc4] ss:$16 sps:$4 sm:$0xff]   ;;  %v1979_v25 = vld [vmem:[#allocation2 + $0xcc] ss:$16 sps:$4 sm:$0xff]  }
  0x1b   :  { %v1981_v26 = vld [vmem:[#allocation2 + $0xc0] ss:$16 sps:$4 sm:$0xff]   ;;  %v1982_v27 = vld [vmem:[#allocation2 + $0xc8] ss:$16 sps:$4 sm:$0xff]   ;;  %v1983_v28 = vld [vmem:[#allocation2 + $0xe4] ss:$16 sps:$4 sm:$0xff]  }
  0x1c   :  { %1054 = vmatpush1.bf16.msra.mxu0 %v1957_v10  ;;  %1183 = vmatpush1.bf16.msra.mxu1 %v1958_v11  ;;  %v1985_v29 = vld [vmem:[#allocation2 + $0xec] ss:$16 sps:$4 sm:$0xff]   ;;  %v1987_v30 = vld [vmem:[#allocation2 + $0xe0] ss:$16 sps:$4 sm:$0xff]   ;;  %v1988_v31 = vld [vmem:[#allocation2 + $0xe8] ss:$16 sps:$4 sm:$0xff]  }
  0x1d   :  { %1055 = vmatprep.subr.bf16.mxu0 %v1959_v12  ;;  %1184 = vmatprep.subr.bf16.mxu1 %v1961_v13  ;;  %v1989_v32 = vld [vmem:[#allocation2 + $0x104] ss:$16 sps:$4 sm:$0xff]   ;;  %v1991_v33 = vld [vmem:[#allocation2 + $0x10c] ss:$16 sps:$4 sm:$0xff]   ;;  %v1993_v34 = vld [vmem:[#allocation2 + $0x100] ss:$16 sps:$4 sm:$0xff]  }
  0x1e   :  { %v1994_v35 = vld [vmem:[#allocation2 + $0x108] ss:$16 sps:$4 sm:$0xff]   ;;  %v1995_v36 = vld [vmem:[#allocation2 + $0x124] ss:$16 sps:$4 sm:$0xff]   ;;  %v1997_v37 = vld [vmem:[#allocation2 + $0x12c] ss:$16 sps:$4 sm:$0xff]  }
  0x1f   :  { %v1999_v38 = vld [vmem:[#allocation2 + $0x120] ss:$16 sps:$4 sm:$0xff]   ;;  %v2000_v39 = vld [vmem:[#allocation2 + $0x128] ss:$16 sps:$4 sm:$0xff]   ;;  %v2001_v40 = vld [vmem:[#allocation2 + $0x144] ss:$16 sps:$4 sm:$0xff]  }
  0x20   :  { %1056 = vmatpush1.bf16.msra.mxu0 %v1963_v14  ;;  %1185 = vmatpush1.bf16.msra.mxu1 %v1964_v15  ;;  %v2003_v41 = vld [vmem:[#allocation2 + $0x14c] ss:$16 sps:$4 sm:$0xff]   ;;  %v2005_v42 = vld [vmem:[#allocation2 + $0x140] ss:$16 sps:$4 sm:$0xff]   ;;  %v2006_v43 = vld [vmem:[#allocation2 + $0x148] ss:$16 sps:$4 sm:$0xff]  }
  0x21   :  { %1057 = vmatprep.subr.bf16.mxu0 %v1965_v16  ;;  %1186 = vmatprep.subr.bf16.mxu1 %v1967_v17  ;;  %v2007_v44 = vld [vmem:[#allocation2 + $0x164] ss:$16 sps:$4 sm:$0xff]   ;;  %v2009_v45 = vld [vmem:[#allocation2 + $0x16c] ss:$16 sps:$4 sm:$0xff]   ;;  %v2011_v46 = vld [vmem:[#allocation2 + $0x160] ss:$16 sps:$4 sm:$0xff]  }
  0x22   :  { %v2012_v47 = vld [vmem:[#allocation2 + $0x168] ss:$16 sps:$4 sm:$0xff]   ;;  %v2013_v49 = vld [vmem:[#allocation2 + $0x184] ss:$16 sps:$4 sm:$0xff]   ;;  %v2015_v50 = vld [vmem:[#allocation2 + $0x18c] ss:$16 sps:$4 sm:$0xff]  }
  0x23   :  { %v2039_v48 = vld [vmem:[%s2413_s0 + $0x4] ss:$20 sps:$4 sm:$0xff]   ;;  %v2017_v51 = vld [vmem:[#allocation2 + $0x180] ss:$16 sps:$4 sm:$0xff]   ;;  %v2021_v54 = vld [vmem:[#allocation2 + $0x1ac] ss:$16 sps:$4 sm:$0xff]  }
  0x24   :  { %1058 = vmatpush1.bf16.msra.mxu0 %v1969_v18  ;;  %1187 = vmatpush1.bf16.msra.mxu1 %v1970_v19  ;;  %v2018_v52 = vld [vmem:[#allocation2 + $0x188] ss:$16 sps:$4 sm:$0xff]   ;;  %v2019_v53 = vld [vmem:[#allocation2 + $0x1a4] ss:$16 sps:$4 sm:$0xff]   ;;  %v2023_v55 = vld [vmem:[#allocation2 + $0x1a0] ss:$16 sps:$4 sm:$0xff]  }
  0x25   :  { %1059 = vmatprep.subr.bf16.mxu0 %v1971_v20  ;;  %1188 = vmatprep.subr.bf16.mxu1 %v1973_v21  ;;  %v2024_v56 = vld [vmem:[#allocation2 + $0x1a8] ss:$16 sps:$4 sm:$0xff]   ;;  %v2025_v57 = vld [vmem:[#allocation2 + $0x1c4] ss:$16 sps:$4 sm:$0xff]   ;;  %v2027_v58 = vld [vmem:[#allocation2 + $0x1cc] ss:$16 sps:$4 sm:$0xff]  }
  0x26   :  { %1081 = vmatprep.mubr.bf16.mxu0 %v2039_v48  ;;  %1210 = vmatprep.mubr.bf16.mxu1 %v2039_v48  ;;  %v2029_v59 = vld [vmem:[#allocation2 + $0x1c0] ss:$16 sps:$4 sm:$0xff]   ;;  %v2030_v60 = vld [vmem:[#allocation2 + $0x1c8] ss:$16 sps:$4 sm:$0xff]   ;;  %v2031_v61 = vld [vmem:[#allocation2 + $0x1e4] ss:$16 sps:$4 sm:$0xff]  }
  0x27   :  { %v2033_v62 = vld [vmem:[#allocation2 + $0x1ec] ss:$16 sps:$4 sm:$0xff]   ;;  %v2035_v63 = vld [vmem:[#allocation2 + $0x1e0] ss:$16 sps:$4 sm:$0xff]   ;;  %v2036_v0 = vld [vmem:[#allocation2 + $0x1e8] ss:$16 sps:$4 sm:$0xff]  }
  0x28   :  { %1060 = vmatpush1.bf16.msra.mxu0 %v1975_v22  ;;  %1189 = vmatpush1.bf16.msra.mxu1 %v1976_v23  ;;  %v2042_v1 = vld [vmem:[#allocation2 + $0x204] ss:$16 sps:$4 sm:$0xff]   ;;  %v2045_v2 = vld [vmem:[#allocation2 + $0x20c] ss:$16 sps:$4 sm:$0xff]   ;;  %v2040_v4 = vld [vmem:[#allocation2 + $0x200] ss:$16 sps:$4 sm:$0xff]  }
  0x29   :  { %1061 = vmatprep.subr.bf16.mxu0 %v1977_v24  ;;  %1190 = vmatprep.subr.bf16.mxu1 %v1979_v25  ;;  %v2037_v3 = vld [vmem:[%s2413_s0] ss:$20 sps:$4 sm:$0xff]   ;;  %v2043_v5 = vld [vmem:[#allocation2 + $0x208] ss:$16 sps:$4 sm:$0xff]   ;;  %v2051_v7 = vld [vmem:[#allocation2 + $0x22c] ss:$16 sps:$4 sm:$0xff]  }
  0x2a   :  { %v2048_v6 = vld [vmem:[#allocation2 + $0x224] ss:$16 sps:$4 sm:$0xff]   ;;  %v2046_v8 = vld [vmem:[#allocation2 + $0x220] ss:$16 sps:$4 sm:$0xff]   ;;  %v2049_v9 = vld [vmem:[#allocation2 + $0x228] ss:$16 sps:$4 sm:$0xff]  }
  0x2b   :  { %v2054_v10 = vld [vmem:[#allocation2 + $0x244] ss:$16 sps:$4 sm:$0xff]   ;;  %v2057_v11 = vld [vmem:[#allocation2 + $0x24c] ss:$16 sps:$4 sm:$0xff]   ;;  %v2052_v12 = vld [vmem:[#allocation2 + $0x240] ss:$16 sps:$4 sm:$0xff]  }
  0x2c   :  { %1062 = vmatpush1.bf16.msra.mxu0 %v1981_v26  ;;  %1191 = vmatpush1.bf16.msra.mxu1 %v1982_v27  ;;  %v2055_v13 = vld [vmem:[#allocation2 + $0x248] ss:$16 sps:$4 sm:$0xff]   ;;  %v2060_v14 = vld [vmem:[#allocation2 + $0x264] ss:$16 sps:$4 sm:$0xff]   ;;  %v2063_v15 = vld [vmem:[#allocation2 + $0x26c] ss:$16 sps:$4 sm:$0xff]  }
  0x2d   :  { %1063 = vmatprep.subr.bf16.mxu0 %v1983_v28  ;;  %1192 = vmatprep.subr.bf16.mxu1 %v1985_v29  ;;  %v2058_v16 = vld [vmem:[#allocation2 + $0x260] ss:$16 sps:$4 sm:$0xff]   ;;  %v2061_v17 = vld [vmem:[#allocation2 + $0x268] ss:$16 sps:$4 sm:$0xff]   ;;  %v2066_v18 = vld [vmem:[#allocation2 + $0x284] ss:$16 sps:$4 sm:$0xff]  }
  0x2e   :  { %v2069_v19 = vld [vmem:[#allocation2 + $0x28c] ss:$16 sps:$4 sm:$0xff]   ;;  %v2064_v20 = vld [vmem:[#allocation2 + $0x280] ss:$16 sps:$4 sm:$0xff]   ;;  %v2067_v21 = vld [vmem:[#allocation2 + $0x288] ss:$16 sps:$4 sm:$0xff]  }
  0x2f   :  { %v2072_v22 = vld [vmem:[#allocation2 + $0x2a4] ss:$16 sps:$4 sm:$0xff]   ;;  %v2075_v23 = vld [vmem:[#allocation2 + $0x2ac] ss:$16 sps:$4 sm:$0xff]   ;;  %v2070_v24 = vld [vmem:[#allocation2 + $0x2a0] ss:$16 sps:$4 sm:$0xff]  }
  0x30   :  { %1064 = vmatpush1.bf16.msra.mxu0 %v1987_v30  ;;  %1193 = vmatpush1.bf16.msra.mxu1 %v1988_v31  ;;  %v2073_v25 = vld [vmem:[#allocation2 + $0x2a8] ss:$16 sps:$4 sm:$0xff]   ;;  %v2078_v26 = vld [vmem:[#allocation2 + $0x2c4] ss:$16 sps:$4 sm:$0xff]   ;;  %v2081_v27 = vld [vmem:[#allocation2 + $0x2cc] ss:$16 sps:$4 sm:$0xff]  }
  0x31   :  { %1065 = vmatprep.subr.bf16.mxu0 %v1989_v32  ;;  %1194 = vmatprep.subr.bf16.mxu1 %v1991_v33  ;;  %v2076_v28 = vld [vmem:[#allocation2 + $0x2c0] ss:$16 sps:$4 sm:$0xff]   ;;  %v2079_v29 = vld [vmem:[#allocation2 + $0x2c8] ss:$16 sps:$4 sm:$0xff]   ;;  %v2084_v31 = vld [vmem:[#allocation2 + $0x2e4] ss:$16 sps:$4 sm:$0xff]  }
  0x32   :  { %v2138_v30 = vld [vmem:[%s2413_s0 + $0xc] ss:$20 sps:$4 sm:$0xff]  }
  0x33   :  { %v2087_v32 = vld [vmem:[#allocation2 + $0x2ec] ss:$16 sps:$4 sm:$0xff]   ;;  %v2082_v33 = vld [vmem:[#allocation2 + $0x2e0] ss:$16 sps:$4 sm:$0xff]  }
  0x34   :  { %1066 = vmatpush1.bf16.msra.mxu0 %v1993_v34  ;;  %1195 = vmatpush1.bf16.msra.mxu1 %v1994_v35  ;;  %v2085_v34 = vld [vmem:[#allocation2 + $0x2e8] ss:$16 sps:$4 sm:$0xff]   ;;  %v2090_v35 = vld [vmem:[#allocation2 + $0x304] ss:$16 sps:$4 sm:$0xff]   ;;  %v2111_v48 = vld [vmem:[#allocation2 + $0x36c] ss:$16 sps:$4 sm:$0xff]  }
  0x35   :  { %1067 = vmatprep.subr.bf16.mxu0 %v1995_v36  ;;  %1196 = vmatprep.subr.bf16.mxu1 %v1997_v37  ;;  %v2093_v36 = vld [vmem:[#allocation2 + $0x30c] ss:$16 sps:$4 sm:$0xff]   ;;  %v2088_v37 = vld [vmem:[#allocation2 + $0x300] ss:$16 sps:$4 sm:$0xff]  }
  0x38   :  { %1068 = vmatpush1.bf16.msra.mxu0 %v1999_v38  ;;  %1197 = vmatpush1.bf16.msra.mxu1 %v2000_v39  ;;  %v2091_v38 = vld [vmem:[#allocation2 + $0x308] ss:$16 sps:$4 sm:$0xff]   ;;  %v2096_v39 = vld [vmem:[#allocation2 + $0x324] ss:$16 sps:$4 sm:$0xff]  }
  0x39   :  { %1069 = vmatprep.subr.bf16.mxu0 %v2001_v40  ;;  %1198 = vmatprep.subr.bf16.mxu1 %v2003_v41  ;;  %v2099_v40 = vld [vmem:[#allocation2 + $0x32c] ss:$16 sps:$4 sm:$0xff]   ;;  %v2094_v41 = vld [vmem:[#allocation2 + $0x320] ss:$16 sps:$4 sm:$0xff]  }
  0x3c   :  { %1070 = vmatpush1.bf16.msra.mxu0 %v2005_v42  ;;  %1199 = vmatpush1.bf16.msra.mxu1 %v2006_v43  ;;  %v2097_v42 = vld [vmem:[#allocation2 + $0x328] ss:$16 sps:$4 sm:$0xff]   ;;  %v2102_v43 = vld [vmem:[#allocation2 + $0x344] ss:$16 sps:$4 sm:$0xff]  }
  0x3d   :  { %1071 = vmatprep.subr.bf16.mxu0 %v2007_v44  ;;  %1200 = vmatprep.subr.bf16.mxu1 %v2009_v45  ;;  %v2105_v44 = vld [vmem:[#allocation2 + $0x34c] ss:$16 sps:$4 sm:$0xff]   ;;  %v2100_v45 = vld [vmem:[#allocation2 + $0x340] ss:$16 sps:$4 sm:$0xff]  }
  0x40   :  { %1072 = vmatpush1.bf16.msra.mxu0 %v2011_v46  ;;  %1201 = vmatpush1.bf16.msra.mxu1 %v2012_v47  ;;  %v2103_v46 = vld [vmem:[#allocation2 + $0x348] ss:$16 sps:$4 sm:$0xff]   ;;  %v2108_v47 = vld [vmem:[#allocation2 + $0x364] ss:$16 sps:$4 sm:$0xff]  }
  0x41   :  { %1073 = vmatprep.subr.bf16.mxu0 %v2013_v49  ;;  %1202 = vmatprep.subr.bf16.mxu1 %v2015_v50  ;;  %v2106_v49 = vld [vmem:[#allocation2 + $0x360] ss:$16 sps:$4 sm:$0xff]   ;;  %v2109_v50 = vld [vmem:[#allocation2 + $0x368] ss:$16 sps:$4 sm:$0xff]  }
  0x44   :  { %1074 = vmatpush1.bf16.msra.mxu0 %v2017_v51  ;;  %1203 = vmatpush1.bf16.msra.mxu1 %v2018_v52  ;;  %v2114_v51 = vld [vmem:[#allocation2 + $0x384] ss:$16 sps:$4 sm:$0xff]   ;;  %v2117_v52 = vld [vmem:[#allocation2 + $0x38c] ss:$16 sps:$4 sm:$0xff]  }
  0x45   :  { %1075 = vmatprep.subr.bf16.mxu0 %v2019_v53  ;;  %1204 = vmatprep.subr.bf16.mxu1 %v2021_v54  ;;  %v2112_v53 = vld [vmem:[#allocation2 + $0x380] ss:$16 sps:$4 sm:$0xff]   ;;  %v2115_v54 = vld [vmem:[#allocation2 + $0x388] ss:$16 sps:$4 sm:$0xff]  }
  0x48   :  { %1076 = vmatpush1.bf16.msra.mxu0 %v2023_v55  ;;  %1205 = vmatpush1.bf16.msra.mxu1 %v2024_v56  ;;  %v2120_v55 = vld [vmem:[#allocation2 + $0x3a4] ss:$16 sps:$4 sm:$0xff]   ;;  %v2123_v56 = vld [vmem:[#allocation2 + $0x3ac] ss:$16 sps:$4 sm:$0xff]  }
  0x49   :  { %1077 = vmatprep.subr.bf16.mxu0 %v2025_v57  ;;  %1206 = vmatprep.subr.bf16.mxu1 %v2027_v58  ;;  %v2118_v57 = vld [vmem:[#allocation2 + $0x3a0] ss:$16 sps:$4 sm:$0xff]   ;;  %v2121_v58 = vld [vmem:[#allocation2 + $0x3a8] ss:$16 sps:$4 sm:$0xff]  }
  0x4c   :  { %1078 = vmatpush1.bf16.msra.mxu0 %v2029_v59  ;;  %1207 = vmatpush1.bf16.msra.mxu1 %v2030_v60  ;;  %v2126_v59 = vld [vmem:[#allocation2 + $0x3c4] ss:$16 sps:$4 sm:$0xff]   ;;  %v2129_v60 = vld [vmem:[#allocation2 + $0x3cc] ss:$16 sps:$4 sm:$0xff]  }
  0x4d   :  { %1079 = vmatprep.subr.bf16.mxu0 %v2031_v61  ;;  %1208 = vmatprep.subr.bf16.mxu1 %v2033_v62  ;;  %v2124_v61 = vld [vmem:[#allocation2 + $0x3c0] ss:$16 sps:$4 sm:$0xff]   ;;  %v2127_v62 = vld [vmem:[#allocation2 + $0x3c8] ss:$16 sps:$4 sm:$0xff]  }
  0x50   :  { %1080 = vmatpush1.bf16.msra.mxu0 %v2035_v63  ;;  %1209 = vmatpush1.bf16.msra.mxu1 %v2036_v0  ;;  %v2132_v63 = vld [vmem:[#allocation2 + $0x3e4] ss:$16 sps:$4 sm:$0xff]   ;;  %v2135_v0 = vld [vmem:[#allocation2 + $0x3ec] ss:$16 sps:$4 sm:$0xff]  }
  0x51   :  { %1092 = vmatprep.subr.bf16.mxu0 %v2042_v1  ;;  %1221 = vmatprep.subr.bf16.mxu1 %v2045_v2  ;;  %v2130_v1 = vld [vmem:[#allocation2 + $0x3e0] ss:$16 sps:$4 sm:$0xff]   ;;  %v2133_v2 = vld [vmem:[#allocation2 + $0x3e8] ss:$16 sps:$4 sm:$0xff]  }
  0x53   :  { %1082 = vmatmul.mubr.bf16.vlgmr.msra.gmra.mrb[0].mxu0 %v2037_v3  ;;  %1211 = vmatmul.mubr.bf16.vlgmr.msra.gmra.mrb[0].mxu1 %v2037_v3  ;;  %v2141_v3 = vld [vmem:[#allocation2 + $0x404] ss:$16 sps:$4 sm:$0xff]  }
  0x54   :  { %1093 = vmatpush1.bf16.msra.mxu0 %v2040_v4  ;;  %1222 = vmatpush1.bf16.msra.mxu1 %v2043_v5  ;;  %v2136_v4 = vld [vmem:[%s2413_s0 + $0x8] ss:$20 sps:$4 sm:$0xff]  }
  0x55   :  { %1094 = vmatprep.subr.bf16.mxu0 %v2048_v6  ;;  %1223 = vmatprep.subr.bf16.mxu1 %v2051_v7  ;;  %v2144_v5 = vld [vmem:[#allocation2 + $0x40c] ss:$16 sps:$4 sm:$0xff]   ;;  %v2139_v6 = vld [vmem:[#allocation2 + $0x400] ss:$16 sps:$4 sm:$0xff]   ;;  %v2142_v7 = vld [vmem:[#allocation2 + $0x408] ss:$16 sps:$4 sm:$0xff]  }
  0x56   :  { %1124 = vmatprep.mubr.bf16.mxu0 %v2138_v30  ;;  %1253 = vmatprep.mubr.bf16.mxu1 %v2138_v30  ;;  %v2180_v30 = vld [vmem:[#allocation2 + $0x4cc] ss:$16 sps:$4 sm:$0xff]  }
  0x58   :  { %1095 = vmatpush1.bf16.msra.mxu0 %v2046_v8  ;;  %1224 = vmatpush1.bf16.msra.mxu1 %v2049_v9  ;;  %v2147_v8 = vld [vmem:[#allocation2 + $0x424] ss:$16 sps:$4 sm:$0xff]   ;;  %v2150_v9 = vld [vmem:[#allocation2 + $0x42c] ss:$16 sps:$4 sm:$0xff]  }
  0x59   :  { %1096 = vmatprep.subr.bf16.mxu0 %v2054_v10  ;;  %1225 = vmatprep.subr.bf16.mxu1 %v2057_v11  ;;  %v2145_v10 = vld [vmem:[#allocation2 + $0x420] ss:$16 sps:$4 sm:$0xff]   ;;  %v2148_v11 = vld [vmem:[#allocation2 + $0x428] ss:$16 sps:$4 sm:$0xff]  }
  0x5c   :  { %1097 = vmatpush1.bf16.msra.mxu0 %v2052_v12  ;;  %1226 = vmatpush1.bf16.msra.mxu1 %v2055_v13  ;;  %v2153_v12 = vld [vmem:[#allocation2 + $0x444] ss:$16 sps:$4 sm:$0xff]   ;;  %v2156_v13 = vld [vmem:[#allocation2 + $0x44c] ss:$16 sps:$4 sm:$0xff]  }
  0x5d   :  { %1098 = vmatprep.subr.bf16.mxu0 %v2060_v14  ;;  %1227 = vmatprep.subr.bf16.mxu1 %v2063_v15  ;;  %v2151_v14 = vld [vmem:[#allocation2 + $0x440] ss:$16 sps:$4 sm:$0xff]   ;;  %v2154_v15 = vld [vmem:[#allocation2 + $0x448] ss:$16 sps:$4 sm:$0xff]  }
  0x60   :  { %1099 = vmatpush1.bf16.msra.mxu0 %v2058_v16  ;;  %1228 = vmatpush1.bf16.msra.mxu1 %v2061_v17  ;;  %v2247_v16 = vmov 0   ;;  %v2159_v17 = vld [vmem:[#allocation2 + $0x464] ss:$16 sps:$4 sm:$0xff]  }
  0x61   :  { %1100 = vmatprep.subr.bf16.mxu0 %v2066_v18  ;;  %1229 = vmatprep.subr.bf16.mxu1 %v2069_v19  ;;  %v2162_v18 = vld [vmem:[#allocation2 + $0x46c] ss:$16 sps:$4 sm:$0xff]   ;;  %v2157_v19 = vld [vmem:[#allocation2 + $0x460] ss:$16 sps:$4 sm:$0xff]  }
  0x64   :  { %1101 = vmatpush1.bf16.msra.mxu0 %v2064_v20  ;;  %1230 = vmatpush1.bf16.msra.mxu1 %v2067_v21  ;;  %v2160_v20 = vld [vmem:[#allocation2 + $0x468] ss:$16 sps:$4 sm:$0xff]   ;;  %v2165_v21 = vld [vmem:[#allocation2 + $0x484] ss:$16 sps:$4 sm:$0xff]  }
  0x65   :  { %1102 = vmatprep.subr.bf16.mxu0 %v2072_v22  ;;  %1231 = vmatprep.subr.bf16.mxu1 %v2075_v23  ;;  %v2168_v22 = vld [vmem:[#allocation2 + $0x48c] ss:$16 sps:$4 sm:$0xff]   ;;  %v2163_v23 = vld [vmem:[#allocation2 + $0x480] ss:$16 sps:$4 sm:$0xff]  }
  0x68   :  { %1103 = vmatpush1.bf16.msra.mxu0 %v2070_v24  ;;  %1232 = vmatpush1.bf16.msra.mxu1 %v2073_v25  ;;  %v2166_v24 = vld [vmem:[#allocation2 + $0x488] ss:$16 sps:$4 sm:$0xff]   ;;  %v2171_v25 = vld [vmem:[#allocation2 + $0x4a4] ss:$16 sps:$4 sm:$0xff]  }
  0x69   :  { %1104 = vmatprep.subr.bf16.mxu0 %v2078_v26  ;;  %1233 = vmatprep.subr.bf16.mxu1 %v2081_v27  ;;  %v2174_v26 = vld [vmem:[#allocation2 + $0x4ac] ss:$16 sps:$4 sm:$0xff]   ;;  %v2169_v27 = vld [vmem:[#allocation2 + $0x4a0] ss:$16 sps:$4 sm:$0xff]  }
  0x6c   :  { %1105 = vmatpush1.bf16.msra.mxu0 %v2076_v28  ;;  %1234 = vmatpush1.bf16.msra.mxu1 %v2079_v29  ;;  %v2172_v28 = vld [vmem:[#allocation2 + $0x4a8] ss:$16 sps:$4 sm:$0xff]   ;;  %v2177_v29 = vld [vmem:[#allocation2 + $0x4c4] ss:$16 sps:$4 sm:$0xff]  }
  0x6d   :  { %1106 = vmatprep.subr.bf16.mxu0 %v2084_v31  ;;  %1235 = vmatprep.subr.bf16.mxu1 %v2087_v32  ;;  %v2175_v31 = vld [vmem:[#allocation2 + $0x4c0] ss:$16 sps:$4 sm:$0xff]   ;;  %v2178_v32 = vld [vmem:[#allocation2 + $0x4c8] ss:$16 sps:$4 sm:$0xff]  }
  0x70   :  { %1107 = vmatpush1.bf16.msra.mxu0 %v2082_v33  ;;  %1236 = vmatpush1.bf16.msra.mxu1 %v2085_v34  ;;  %v2183_v33 = vld [vmem:[#allocation2 + $0x4e4] ss:$16 sps:$4 sm:$0xff]   ;;  %v2186_v34 = vld [vmem:[#allocation2 + $0x4ec] ss:$16 sps:$4 sm:$0xff]  }
  0x71   :  { %1108 = vmatprep.subr.bf16.mxu0 %v2090_v35  ;;  %1237 = vmatprep.subr.bf16.mxu1 %v2093_v36  ;;  %v2181_v35 = vld [vmem:[#allocation2 + $0x4e0] ss:$16 sps:$4 sm:$0xff]   ;;  %v2184_v36 = vld [vmem:[#allocation2 + $0x4e8] ss:$16 sps:$4 sm:$0xff]  }
  0x74   :  { %1109 = vmatpush1.bf16.msra.mxu0 %v2088_v37  ;;  %1238 = vmatpush1.bf16.msra.mxu1 %v2091_v38  ;;  %v2188_v37 = vld [vmem:[%s2416_s3 + $0x40] sm:$0xff]  }
  0x75   :  { %1110 = vmatprep.subr.bf16.mxu0 %v2096_v39  ;;  %1239 = vmatprep.subr.bf16.mxu1 %v2099_v40  ;;  %v2189_v38 = vld [vmem:[%s2416_s3 + $0xc0] sm:$0xff]  }
  0x76   :  { %v2187_v39 = vld [vmem:[%s2413_s0 + $0x10] ss:$20 sps:$4 sm:$0xff]  }
  0x77   :  { %v2190_v40 = vld [vmem:[%s2416_s3] sm:$0xff]  }
  0x78   :  { %1111 = vmatpush1.bf16.msra.mxu0 %v2094_v41  ;;  %1240 = vmatpush1.bf16.msra.mxu1 %v2097_v42  ;;  %v2191_v41 = vld [vmem:[%s2416_s3 + $0x80] sm:$0xff]   ;;  %v2192_v42 = vld [vmem:[%s2416_s3 + $0x48] sm:$0xff]  }
  0x79   :  { %1112 = vmatprep.subr.bf16.mxu0 %v2102_v43  ;;  %1241 = vmatprep.subr.bf16.mxu1 %v2105_v44  ;;  %v2193_v43 = vld [vmem:[%s2416_s3 + $0xc8] sm:$0xff]  }
  0x7a   :  { %v2194_v44 = vld [vmem:[%s2416_s3 + $0x8] sm:$0xff]  }
  0x7c   :  { %1113 = vmatpush1.bf16.msra.mxu0 %v2100_v45  ;;  %1242 = vmatpush1.bf16.msra.mxu1 %v2103_v46  ;;  %v2195_v45 = vld [vmem:[%s2416_s3 + $0x88] sm:$0xff]   ;;  %v2196_v46 = vld [vmem:[%s2416_s3 + $0x50] sm:$0xff]  }
  0x7d   :  { %1114 = vmatprep.subr.bf16.mxu0 %v2108_v47  ;;  %1243 = vmatprep.subr.bf16.mxu1 %v2111_v48  ;;  %v2197_v47 = vld [vmem:[%s2416_s3 + $0xd0] sm:$0xff]  }
  0x7e   :  { %v2198_v48 = vld [vmem:[%s2416_s3 + $0x10] sm:$0xff]  }
  0x80   :  { %1115 = vmatpush1.bf16.msra.mxu0 %v2106_v49  ;;  %1244 = vmatpush1.bf16.msra.mxu1 %v2109_v50  ;;  %v2199_v49 = vld [vmem:[%s2416_s3 + $0x90] sm:$0xff]   ;;  %v2200_v50 = vld [vmem:[%s2416_s3 + $0x58] sm:$0xff]  }
  0x81   :  { %1116 = vmatprep.subr.bf16.mxu0 %v2114_v51  ;;  %1245 = vmatprep.subr.bf16.mxu1 %v2117_v52  ;;  %v2201_v51 = vld [vmem:[%s2416_s3 + $0xd8] sm:$0xff]  }
  0x82   :  { %v2202_v52 = vld [vmem:[%s2416_s3 + $0x18] sm:$0xff]  }
  0x84   :  { %1117 = vmatpush1.bf16.msra.mxu0 %v2112_v53  ;;  %1246 = vmatpush1.bf16.msra.mxu1 %v2115_v54  ;;  %v2203_v53 = vld [vmem:[%s2416_s3 + $0x98] sm:$0xff]   ;;  %v2204_v54 = vld [vmem:[%s2416_s3 + $0x60] sm:$0xff]  }
  0x85   :  { %1118 = vmatprep.subr.bf16.mxu0 %v2120_v55  ;;  %1247 = vmatprep.subr.bf16.mxu1 %v2123_v56  ;;  %v2205_v55 = vld [vmem:[%s2416_s3 + $0xe0] sm:$0xff]  }
  0x86   :  { %v2206_v56 = vld [vmem:[%s2416_s3 + $0x20] sm:$0xff]  }
  0x88   :  { %1119 = vmatpush1.bf16.msra.mxu0 %v2118_v57  ;;  %1248 = vmatpush1.bf16.msra.mxu1 %v2121_v58  ;;  %v2207_v57 = vld [vmem:[%s2416_s3 + $0xa0] sm:$0xff]   ;;  %v2208_v58 = vld [vmem:[%s2416_s3 + $0x68] sm:$0xff]  }
  0x89   :  { %1120 = vmatprep.subr.bf16.mxu0 %v2126_v59  ;;  %1249 = vmatprep.subr.bf16.mxu1 %v2129_v60  ;;  %v2209_v59 = vld [vmem:[%s2416_s3 + $0xe8] sm:$0xff]  }
  0x8a   :  { %v2210_v60 = vld [vmem:[%s2416_s3 + $0x28] sm:$0xff]  }
  0x8c   :  { %1121 = vmatpush1.bf16.msra.mxu0 %v2124_v61  ;;  %1250 = vmatpush1.bf16.msra.mxu1 %v2127_v62  ;;  %v2211_v61 = vld [vmem:[%s2416_s3 + $0xa8] sm:$0xff]   ;;  %v2212_v62 = vld [vmem:[%s2416_s3 + $0x70] sm:$0xff]  }
  0x8d   :  { %1122 = vmatprep.subr.bf16.mxu0 %v2132_v63  ;;  %1251 = vmatprep.subr.bf16.mxu1 %v2135_v0  ;;  %v2213_v63 = vld [vmem:[%s2416_s3 + $0xf0] sm:$0xff]  }
  0x8e   :  { %v2214_v0 = vld [vmem:[%s2416_s3 + $0x30] sm:$0xff]  }
  0x90   :  { %1123 = vmatpush1.bf16.msra.mxu0 %v2130_v1  ;;  %1252 = vmatpush1.bf16.msra.mxu1 %v2133_v2  ;;  %v2215_v1 = vld [vmem:[%s2416_s3 + $0xb0] sm:$0xff]   ;;  %v2216_v2 = vld [vmem:[%s2416_s3 + $0x78] sm:$0xff]  }
  0x91   :  { %1135 = vmatprep.subr.bf16.mxu0 %v2141_v3  ;;  %1264 = vmatprep.subr.bf16.mxu1 %v2144_v5  ;;  %v2217_v3 = vld [vmem:[%s2416_s3 + $0xf8] sm:$0xff]  }
  0x92   :  { %v2219_v5 = vld [vmem:[%s2416_s3 + $0xb8] sm:$0xff]  }
  0x93   :  { %1125 = vmatmul.mubr.bf16.vlgmr.msra.gmra.mrb[0].mxu0 %v2136_v4  ;;  %1254 = vmatmul.mubr.bf16.vlgmr.msra.gmra.mrb[0].mxu1 %v2136_v4  ;;  %v2218_v4 = vld [vmem:[%s2416_s3 + $0x38] sm:$0xff]  }
  0x94   :  { %1136 = vmatpush1.bf16.msra.mxu0 %v2139_v6  ;;  %1265 = vmatpush1.bf16.msra.mxu1 %v2142_v7  ;;  %v203_v6 = vlaneseq }
  0x95   :  { %1137 = vmatprep.subr.bf16.mxu0 %v2147_v8  ;;  %1266 = vmatprep.subr.bf16.mxu1 %v2150_v9 }
  0x96   :  { %1167 = vmatprep.mubr.bf16.mxu0 %v2247_v16  ;;  %1296 = vmatprep.mubr.bf16.mxu1 %v2247_v16  ;;  %v204_v7 = vshrl.u32 %v203_v6, 7 }
  0x98   :  { %1138 = vmatpush1.bf16.msra.mxu0 %v2145_v10  ;;  %1267 = vmatpush1.bf16.msra.mxu1 %v2148_v11  ;;  %v205_v8 = vsub.s32 0, %v204_v7  ;;  %v213_v9 = vsub.s32 2, %v204_v7  ;;  %v201_v10 = vld [vmem:[%s2415_s2] sm:$0xf]  ;;  %v209_v11 = vsub.s32 1, %v204_v7 }
  0x99   :  { %1139 = vmatprep.subr.bf16.mxu0 %v2153_v12  ;;  %1268 = vmatprep.subr.bf16.mxu1 %v2156_v13  ;;  %v217_v12 = vsub.s32 3, %v204_v7 }
  0x9a   :  { %v206_v13 = vrot.slane %v201_v10, %v205_v8 }
  0x9b   :  { %v218_v16 = vrot.slane %v201_v10, %v217_v12 }
  0x9c   :  { %1140 = vmatpush1.bf16.msra.mxu0 %v2151_v14  ;;  %1269 = vmatpush1.bf16.msra.mxu1 %v2154_v15  ;;  %v214_v14 = vrot.slane %v201_v10, %v213_v9  ;;  %v210_v15 = vrot.slane %v201_v10, %v209_v11 }
  0x9d   :  { %1141 = vmatprep.subr.bf16.mxu0 %v2159_v17  ;;  %1270 = vmatprep.subr.bf16.mxu1 %v2162_v18 }
  0xa0   :  { %1142 = vmatpush1.bf16.msra.mxu0 %v2157_v19  ;;  %1271 = vmatpush1.bf16.msra.mxu1 %v2160_v20 }
  0xa1   :  { %1143 = vmatprep.subr.bf16.mxu0 %v2165_v21  ;;  %1272 = vmatprep.subr.bf16.mxu1 %v2168_v22 }
  0xa4   :  { %1144 = vmatpush1.bf16.msra.mxu0 %v2163_v23  ;;  %1273 = vmatpush1.bf16.msra.mxu1 %v2166_v24 }
  0xa5   :  { %1145 = vmatprep.subr.bf16.mxu0 %v2171_v25  ;;  %1274 = vmatprep.subr.bf16.mxu1 %v2174_v26 }
  0xa8   :  { %1146 = vmatpush1.bf16.msra.mxu0 %v2169_v27  ;;  %1275 = vmatpush1.bf16.msra.mxu1 %v2172_v28 }
  0xa9   :  { %1147 = vmatprep.subr.bf16.mxu0 %v2177_v29  ;;  %1276 = vmatprep.subr.bf16.mxu1 %v2180_v30 }
  0xac   :  { %1148 = vmatpush1.bf16.msra.mxu0 %v2175_v31  ;;  %1277 = vmatpush1.bf16.msra.mxu1 %v2178_v32 }
  0xad   :  { %1149 = vmatprep.subr.bf16.mxu0 %v2183_v33  ;;  %1278 = vmatprep.subr.bf16.mxu1 %v2186_v34 }
  0xb0   :  { %1150 = vmatpush1.bf16.msra.mxu0 %v2181_v35  ;;  %1279 = vmatpush1.bf16.msra.mxu1 %v2184_v36 }
  0xb1   :  { %1869 = vmatprep.subr.bf16.mxu0 %v2188_v37  ;;  %1891 = vmatprep.subr.bf16.mxu1 %v2189_v38 }
  0xb3   :  { %1168 = vmatmul.mubr.bf16.vlgmr.msra.gmra.mrb[0].mxu0 %v2187_v39  ;;  %1297 = vmatmul.mubr.bf16.vlgmr.msra.gmra.mrb[0].mxu1 %v2187_v39 }
  0xb4   :  { %1870 = vmatpush3.bf16.msra.mxu0 %v2190_v40  ;;  %1892 = vmatpush3.bf16.msra.mxu1 %v2191_v41 }
  0xb5   :  { %1871 = vmatprep.subr.bf16.mxu0 %v2192_v42  ;;  %1893 = vmatprep.subr.bf16.mxu1 %v2193_v43 }
  0xb8   :  { %1872 = vmatpush3.bf16.msra.mxu0 %v2194_v44  ;;  %1894 = vmatpush3.bf16.msra.mxu1 %v2195_v45 }
  0xb9   :  { %1873 = vmatprep.subr.bf16.mxu0 %v2196_v46  ;;  %1895 = vmatprep.subr.bf16.mxu1 %v2197_v47  ;;  %v1836_v47 = vld [vmem:[%s2417_s4] ss:$0 sm:$0xff] }
  0xbc   :  { %1874 = vmatpush3.bf16.msra.mxu0 %v2198_v48  ;;  %1896 = vmatpush3.bf16.msra.mxu1 %v2199_v49 }
  0xbd   :  { %1875 = vmatprep.subr.bf16.mxu0 %v2200_v50  ;;  %1897 = vmatprep.subr.bf16.mxu1 %v2201_v51 }
  0xc0   :  { %1876 = vmatpush3.bf16.msra.mxu0 %v2202_v52  ;;  %1898 = vmatpush3.bf16.msra.mxu1 %v2203_v53 }
  0xc1   :  { %1877 = vmatprep.subr.bf16.mxu0 %v2204_v54  ;;  %1899 = vmatprep.subr.bf16.mxu1 %v2205_v55 }
  0xc4   :  { %1878 = vmatpush3.bf16.msra.mxu0 %v2206_v56  ;;  %1900 = vmatpush3.bf16.msra.mxu1 %v2207_v57 }
  0xc5   :  { %1879 = vmatprep.subr.bf16.mxu0 %v2208_v58  ;;  %1901 = vmatprep.subr.bf16.mxu1 %v2209_v59 }
  0xc8   :  { %1880 = vmatpush3.bf16.msra.mxu0 %v2210_v60  ;;  %1902 = vmatpush3.bf16.msra.mxu1 %v2211_v61 }
  0xc9   :  { %1881 = vmatprep.subr.bf16.mxu0 %v2212_v62  ;;  %1903 = vmatprep.subr.bf16.mxu1 %v2213_v63 }
  0xcc   :  { %1882 = vmatpush3.bf16.msra.mxu0 %v2214_v0  ;;  %1904 = vmatpush3.bf16.msra.mxu1 %v2215_v1 }
  0xcd   :  { %1883 = vmatprep.subr.bf16.mxu0 %v2216_v2  ;;  %1905 = vmatprep.subr.bf16.mxu1 %v2217_v3 }
  0xd0   :  { %1884 = vmatpush3.bf16.msra.mxu0 %v2218_v4  ;;  %1906 = vmatpush3.bf16.msra.mxu1 %v2219_v5 }
 0x186   :  { %v1169_v17 = vpop.f32.mrb[0].mxu0  ;;  %v1298_v18 = vpop.f32.mrb[0].mxu1 }
 0x187   :  { %v1913_v19 = vadd.f32 %v1169_v17, %v206_v13  ;;  %v1917_v20 = vadd.f32 %v1298_v18, %v214_v14  ;;  %v1171_v21 = vpop.f32.mrb[1].mxu0  ;;  %v1300_v22 = vpop.f32.mrb[1].mxu1 }
 0x188   :  { %v1914_v23 = vadd.f32 %v1171_v21, %v210_v15  ;;  %v1918_v24 = vadd.f32 %v1300_v22, %v218_v16  ;;  %v1173_v25 = vpop.f32.mrb[2].mxu0  ;;  %v1302_v26 = vpop.f32.mrb[2].mxu1 }
 0x189   :  { %v1915_v27 = vadd.f32 %v1173_v25, %v206_v13  ;;  %v1919_v28 = vadd.f32 %v1302_v26, %v214_v14  ;;  %v1175_v29 = vpop.f32.mrb[3].mxu0  ;;  %v1304_v30 = vpop.f32.mrb[3].mxu1  ;;  %v1307_v33 = vmax.f32 %v1913_v19, 0.0  ;;  %v1309_v34 = vmax.f32 %v1917_v20, 0.0 }
 0x18a   :  { %v1916_v31 = vadd.f32 %v1175_v29, %v210_v15  ;;  %v1920_v32 = vadd.f32 %v1304_v30, %v218_v16  ;;  %v1308_v37 = vmax.f32 %v1914_v23, 0.0  ;;  %v1310_v38 = vmax.f32 %v1918_v24, 0.0 }
 0x18b   :  { %v1311_v35 = vmax.f32 %v1915_v27, 0.0  ;;  %v1313_v36 = vmax.f32 %v1919_v28, 0.0 }
 0x18c   :  { %v1312_v39 = vmax.f32 %v1916_v31, 0.0  ;;  %v1314_v40 = vmax.f32 %v1920_v32, 0.0 }
 0x18d   :  { %v1315_v41 = vpack.c.bf16 %v1311_v35, %v1307_v33  ;;  %v1317_v42 = vpack.c.bf16 %v1313_v36, %v1309_v34 }
 0x18e   :  { %v1316_v43 = vpack.c.bf16 %v1312_v39, %v1308_v37  ;;  %v1318_v44 = vpack.c.bf16 %v1314_v40, %v1310_v38 }
 0x190   :  { %1614 = vmatprep.mubr.bf16.mxu0 %v1316_v43  ;;  %1655 = vmatprep.mubr.bf16.mxu1 %v1318_v44 }
 0x191   :  { %1615 = vmatmul.mubr.bf16.vlgmr.msra.gmra.mrb[4].mxu0 %v1315_v41  ;;  %1656 = vmatmul.mubr.bf16.vlgmr.msra.gmra.mrb[4].mxu1 %v1317_v42 }
 0x264   :  { %v1885_v45 = vpop.f32.mrb[4].mxu0  ;;  %v1907_v46 = vpop.f32.mrb[4].mxu1 }
 0x265   :  { %v1886_v48 = vpop.f32.mrb[5].mxu0  ;;  %v1908_v49 = vpop.f32.mrb[5].mxu1 }
 0x266   :  { %v1887_v50 = vadd.f32 %v1886_v48, %v1885_v45  ;;  %v1909_v51 = vadd.f32 %v1908_v49, %v1907_v46  ;;  %v1888_v52 = vpop.f32.mrb[6].mxu0  ;;  %v1910_v53 = vpop.f32.mrb[6].mxu1 }
 0x267   :  { %v1889_v54 = vpop.f32.mrb[7].mxu0  ;;  %v1911_v55 = vpop.f32.mrb[7].mxu1 }
 0x268   :  { %v1617_v56 = vadd.f32 %v1887_v50, %v1836_v47  ;;  %v1890_v57 = vadd.f32 %v1889_v54, %v1888_v52  ;;  %v1912_v58 = vadd.f32 %v1911_v55, %v1910_v53 }
 0x26a   :  { %v1658_v59 = vadd.f32 %v1909_v51, %v1617_v56  ;;  %v1620_v60 = vadd.f32 %v1890_v57, %v1836_v47 }
 0x26c   :  { %1664 = vst [vmem:[%s2418_s5] sm:$0xff] %v1658_v59  ;;  %v1661_v61 = vadd.f32 %v1912_v58, %v1620_v60 }
 0x26e   :  { %1665 = vst [vmem:[%s2418_s5 + $0x8] sm:$0xff] %v1661_v61 }
 0x26f   :  { %1670 = vsyncpa [#allocation3], 1 }

</bundles_post_ra>
